<compile_context>
chip_gen: v6e
topology: v6e:2x2x1
jax: 0.10.0
libtpu: 0.0.40
codegen_flags: <defaults>
</compile_context>

<pallas_src>
import functools
import math

import numpy as np

import jax
import jax.numpy as jnp
from jax.experimental import pallas as pl
from jax.experimental.pallas import tpu as pltpu

_EPS_BN = 1e-5


def _round_up(x, m):
    return (x + m - 1) // m * m


def _choose_batch_tile(B):
    # 512 rows: multiple of 256 (v6e MXU M-dim), ~85% of the measured HBM
    # roofline tile curve, and the per-step footprint (double-buffered x/out +
    # ~160 KB resident weights) stays far below v5e's 16 MiB scoped-VMEM
    # default and v7x's 32 MiB.  For small batches use one full-batch block
    # (block shape equal to the full array dim is always legal -> no padding).
    return 512 if B > 512 else B


# ----------------------------------------------------------------------------
# Fused kernel: all 5 linear layers + ReLU, activations stay in VMEM / vregs.
# ----------------------------------------------------------------------------
def _make_kernel(n_layers, in_features):
    def kernel(x_ref, w_ref, s_ref, o_ref):
        h = x_ref[...]                                        # (TB, in_features) f32
        for li in range(n_layers):                            # unrolled at trace time
            w = w_ref[li]                                     # (P, P) bf16, zero-padded
            if li == 0:
                w = w[:in_features, :]                        # real fan-in of layer 0
            acc = jnp.dot(h.astype(jnp.bfloat16), w,
                          preferred_element_type=jnp.float32)  # bf16 MXU, f32 acc
            # Shift-add + ReLU kept in f32: correct/fast on all generations
            # (v5e has no bf16 VPU).  Zero-padded weight cols / shifts keep the
            # padded activation lanes at exactly 0 through every layer.
            # TODO(synk): a bf16 elementwise path would shave a few VPU ops on v6e/v7x.
            h = jnp.maximum(acc + s_ref[li:li + 1, :], 0.0)
        o_ref[...] = h.astype(o_ref.dtype)
    return kernel


def mlp_encoder_fused(x2d, w_slab, shifts):
    """x2d: (B, in_features) f32.  w_slab: (n_layers, P, P) bf16.  shifts: (8k, P) f32."""
    B, in_f = x2d.shape
    n_layers, P, _ = w_slab.shape
    TB = _choose_batch_tile(B)
    grid = (pl.cdiv(B, TB),)

    flops = 2 * B * (in_f * P + (n_layers - 1) * P * P)
    bytes_accessed = B * in_f * 4 + B * P * 4 + w_slab.size * 2 + shifts.size * 4

    # Blocked specs default to VMEM placement; weights/shifts use a constant
    # block index so Pallas skips re-DMA across grid steps (VMEM-resident).
    return pl.pallas_call(
        _make_kernel(n_layers, in_f),
        out_shape=jax.ShapeDtypeStruct((B, P), jnp.float32),
        grid=grid,
        in_specs=[
            pl.BlockSpec((TB, in_f), lambda i: (i, 0)),
            pl.BlockSpec((n_layers, P, P), lambda i: (0, 0, 0)),
            pl.BlockSpec((shifts.shape[0], P), lambda i: (0, 0)),
        ],
        out_specs=pl.BlockSpec((TB, P), lambda i: (i, 0)),
        compiler_params=pltpu.CompilerParams(
            dimension_semantics=("parallel",)),       # megacore split on v7x
        cost_estimate=pl.CostEstimate(
            flops=flops, transcendentals=0, bytes_accessed=bytes_accessed),
    )(x2d, w_slab, shifts)


# ----------------------------------------------------------------------------
# Deterministic parameter initialization (synthetic, no checkpoint).
# Weights folded with the BN eval affine, packed into a single padded bf16
# slab; shifts packed into a single (8, 128) f32 tile.
# ----------------------------------------------------------------------------
def init_params(key, in_size=1, latent_dim=32, features_start=16, num_layers=4,
                context_size=96, bn=True):
    in_features = in_size * context_size
    dims = [in_features, features_start]
    feats = features_start
    for _ in range(num_layers - 1):
        dims.append(feats * 2)
        feats *= 2
    dims.append(latent_dim)
    n_layers = len(dims) - 1

    P = _round_up(max(dims), 128)
    w_slab = np.zeros((n_layers, P, P), np.float32)
    s_slab = np.zeros((_round_up(n_layers, 8), P), np.float32)

    keys = jax.random.split(key, 2 * n_layers)
    for i in range(n_layers):
        cin, cout = dims[i], dims[i + 1]
        w = jax.random.normal(keys[2 * i], (cin, cout), jnp.float32) / math.sqrt(cin)
        b = jax.random.normal(keys[2 * i + 1], (cout,), jnp.float32) * 0.02
        # TODO(synk): last layer (create_linear(feats, latent_dim)) assumed to have no BN.
        has_bn = bn and (i < n_layers - 1)
        if has_bn:
            # BN eval fold (running_mean=0, running_var=1, gamma=1, beta=0):
            #   scale = 1/sqrt(var+eps), shift = beta - mean*scale (+ bias*scale)
            scale = 1.0 / math.sqrt(1.0 + _EPS_BN)
            shift = b * scale
        else:
            scale = 1.0
            shift = b
        w_slab[i, :cin, :cout] = np.asarray(w) * scale
        s_slab[i, :cout] = np.asarray(shift)

    return jnp.asarray(w_slab).astype(jnp.bfloat16), jnp.asarray(s_slab)


# ----------------------------------------------------------------------------
# Forward pass (mirrors MLPEncoder.forward).
# ----------------------------------------------------------------------------
def mlp_encoder_forward(params, x, *, latent_dim):
    w_slab, shifts = params
    # torch: x.flatten(1, 2)
    x2d = x.reshape(x.shape[0], x.shape[1] * x.shape[2], *x.shape[3:])
    x2d = x2d.astype(jnp.float32)
    out_padded = mlp_encoder_fused(x2d, w_slab, shifts)
    # Kernel stores a lane-dense (B, 128) slab (unmasked vst); slicing down to
    # latent_dim here is free layout plumbing in XLA.
    return out_padded[:, :latent_dim]


if __name__ == "__main__":
    key = jax.random.PRNGKey(0)
    k_params, k_x = jax.random.split(key)

    in_size, latent_dim, features_start, num_layers, context_size = 1, 32, 16, 4, 96
    params = init_params(k_params, in_size=in_size, latent_dim=latent_dim,
                         features_start=features_start, num_layers=num_layers,
                         context_size=context_size, bn=True)

    B = 8
    x = jax.random.normal(k_x, (B, in_size, context_size), jnp.float32)

    fwd = jax.jit(functools.partial(mlp_encoder_forward, latent_dim=latent_dim))
    out = fwd(params, x)
    jax.block_until_ready(out)
    assert out.shape == (B, latent_dim), out.shape

    # Pure-JAX reference mirroring the kernel's bf16-weight / f32-accumulate math.
    w_slab, shifts = params
    h = x.reshape(B, -1).astype(jnp.float32)
    in_f = h.shape[1]
    for li in range(w_slab.shape[0]):
        w = w_slab[li].astype(jnp.float32)
        if li == 0:
            w = w[:in_f, :]
        h = jnp.maximum(
            jnp.dot(h.astype(jnp.bfloat16).astype(jnp.float32), w) + shifts[li:li + 1, :],
            0.0)
    ref = h[:, :latent_dim]
    assert jnp.allclose(out, ref, atol=1e-2, rtol=1e-2), \
        float(jnp.max(jnp.abs(out - ref)))

    print("KERNEL_OK")
</pallas_src>

<mosaic_0001>
module attributes {stable_mosaic.version = 11 : i64} {
  func.func @kernel(%arg0: i32, %arg1: memref<8x96xf32, #tpu.memory_space<vmem>>, %arg2: memref<5x128x128xbf16, #tpu.memory_space<vmem>>, %arg3: memref<8x128xf32, #tpu.memory_space<vmem>>, %arg4: memref<8x128xf32, #tpu.memory_space<vmem>>) attributes {dimension_semantics = [#tpu.dimension_semantics<parallel>], iteration_bounds = array<i64: 1>, scalar_prefetch = 0 : i64, scratch_operands = 0 : i64, tpu.core_type = #tpu.core_type<tc>, window_params = [{transform_indices = @transform_0, window_bounds = array<i64: 8, 96>}, {pipeline_mode = #tpu.pipeline_mode<synchronous>, transform_indices = @transform_1, window_bounds = array<i64: 5, 128, 128>}, {pipeline_mode = #tpu.pipeline_mode<synchronous>, transform_indices = @transform_2, window_bounds = array<i64: 8, 128>}, {transform_indices = @transform_3, window_bounds = array<i64: 8, 128>}]} {
    %c0 = arith.constant 0 : index
    %c0_0 = arith.constant 0 : index
    %0 = vector.load %arg1[%c0, %c0_0] : memref<8x96xf32, #tpu.memory_space<vmem>>, vector<8x96xf32>
    %c0_1 = arith.constant 0 : index
    %c0_2 = arith.constant 0 : index
    %c0_3 = arith.constant 0 : index
    %1 = vector.load %arg2[%c0_1, %c0_2, %c0_3] : memref<5x128x128xbf16, #tpu.memory_space<vmem>>, vector<1x128x128xbf16>
    %2 = vector.shape_cast %1 : vector<1x128x128xbf16> to vector<128x128xbf16>
    %3 = vector.extract_strided_slice %2 {offsets = [0, 0], sizes = [96, 128], strides = [1, 1]} : vector<128x128xbf16> to vector<96x128xbf16>
    %4 = arith.truncf %0 : vector<8x96xf32> to vector<8x96xbf16>
    %cst = arith.constant dense<0.000000e+00> : vector<8x128xf32>
    %5 = tpu.matmul %4, %3, %cst {dimension_numbers = #tpu.dot_dimension_numbers<[1], [0], [0], [1], [0, 0, 1, 1], [], []>} : vector<8x96xbf16>, vector<96x128xbf16>, vector<8x128xf32> -> vector<8x128xf32>
    %c0_4 = arith.constant 0 : index
    %c0_5 = arith.constant 0 : index
    %6 = vector.load %arg3[%c0_4, %c0_5] : memref<8x128xf32, #tpu.memory_space<vmem>>, vector<1x128xf32>
    %7 = vector.broadcast %6 : vector<1x128xf32> to vector<8x128xf32>
    %8 = arith.addf %5, %7 : vector<8x128xf32>
    %cst_6 = arith.constant 0.000000e+00 : f32
    %9 = vector.broadcast %cst_6 : f32 to vector<8x128xf32>
    %10 = arith.maximumf %8, %9 : vector<8x128xf32>
    %c1 = arith.constant 1 : index
    %c0_7 = arith.constant 0 : index
    %c0_8 = arith.constant 0 : index
    %11 = vector.load %arg2[%c1, %c0_7, %c0_8] : memref<5x128x128xbf16, #tpu.memory_space<vmem>>, vector<1x128x128xbf16>
    %12 = vector.shape_cast %11 : vector<1x128x128xbf16> to vector<128x128xbf16>
    %13 = arith.truncf %10 : vector<8x128xf32> to vector<8x128xbf16>
    %cst_9 = arith.constant dense<0.000000e+00> : vector<8x128xf32>
    %14 = tpu.matmul %13, %12, %cst_9 {dimension_numbers = #tpu.dot_dimension_numbers<[1], [0], [0], [1], [0, 0, 1, 1], [], []>} : vector<8x128xbf16>, vector<128x128xbf16>, vector<8x128xf32> -> vector<8x128xf32>
    %c1_10 = arith.constant 1 : index
    %c0_11 = arith.constant 0 : index
    %15 = vector.load %arg3[%c1_10, %c0_11] : memref<8x128xf32, #tpu.memory_space<vmem>>, vector<1x128xf32>
    %16 = vector.broadcast %15 : vector<1x128xf32> to vector<8x128xf32>
    %17 = arith.addf %14, %16 : vector<8x128xf32>
    %cst_12 = arith.constant 0.000000e+00 : f32
    %18 = vector.broadcast %cst_12 : f32 to vector<8x128xf32>
    %19 = arith.maximumf %17, %18 : vector<8x128xf32>
    %c2 = arith.constant 2 : index
    %c0_13 = arith.constant 0 : index
    %c0_14 = arith.constant 0 : index
    %20 = vector.load %arg2[%c2, %c0_13, %c0_14] : memref<5x128x128xbf16, #tpu.memory_space<vmem>>, vector<1x128x128xbf16>
    %21 = vector.shape_cast %20 : vector<1x128x128xbf16> to vector<128x128xbf16>
    %22 = arith.truncf %19 : vector<8x128xf32> to vector<8x128xbf16>
    %cst_15 = arith.constant dense<0.000000e+00> : vector<8x128xf32>
    %23 = tpu.matmul %22, %21, %cst_15 {dimension_numbers = #tpu.dot_dimension_numbers<[1], [0], [0], [1], [0, 0, 1, 1], [], []>} : vector<8x128xbf16>, vector<128x128xbf16>, vector<8x128xf32> -> vector<8x128xf32>
    %c2_16 = arith.constant 2 : index
    %c0_17 = arith.constant 0 : index
    %24 = vector.load %arg3[%c2_16, %c0_17] : memref<8x128xf32, #tpu.memory_space<vmem>>, vector<1x128xf32>
    %25 = vector.broadcast %24 : vector<1x128xf32> to vector<8x128xf32>
    %26 = arith.addf %23, %25 : vector<8x128xf32>
    %cst_18 = arith.constant 0.000000e+00 : f32
    %27 = vector.broadcast %cst_18 : f32 to vector<8x128xf32>
    %28 = arith.maximumf %26, %27 : vector<8x128xf32>
    %c3 = arith.constant 3 : index
    %c0_19 = arith.constant 0 : index
    %c0_20 = arith.constant 0 : index
    %29 = vector.load %arg2[%c3, %c0_19, %c0_20] : memref<5x128x128xbf16, #tpu.memory_space<vmem>>, vector<1x128x128xbf16>
    %30 = vector.shape_cast %29 : vector<1x128x128xbf16> to vector<128x128xbf16>
    %31 = arith.truncf %28 : vector<8x128xf32> to vector<8x128xbf16>
    %cst_21 = arith.constant dense<0.000000e+00> : vector<8x128xf32>
    %32 = tpu.matmul %31, %30, %cst_21 {dimension_numbers = #tpu.dot_dimension_numbers<[1], [0], [0], [1], [0, 0, 1, 1], [], []>} : vector<8x128xbf16>, vector<128x128xbf16>, vector<8x128xf32> -> vector<8x128xf32>
    %c3_22 = arith.constant 3 : index
    %c0_23 = arith.constant 0 : index
    %33 = vector.load %arg3[%c3_22, %c0_23] : memref<8x128xf32, #tpu.memory_space<vmem>>, vector<1x128xf32>
    %34 = vector.broadcast %33 : vector<1x128xf32> to vector<8x128xf32>
    %35 = arith.addf %32, %34 : vector<8x128xf32>
    %cst_24 = arith.constant 0.000000e+00 : f32
    %36 = vector.broadcast %cst_24 : f32 to vector<8x128xf32>
    %37 = arith.maximumf %35, %36 : vector<8x128xf32>
    %c4 = arith.constant 4 : index
    %c0_25 = arith.constant 0 : index
    %c0_26 = arith.constant 0 : index
    %38 = vector.load %arg2[%c4, %c0_25, %c0_26] : memref<5x128x128xbf16, #tpu.memory_space<vmem>>, vector<1x128x128xbf16>
    %39 = vector.shape_cast %38 : vector<1x128x128xbf16> to vector<128x128xbf16>
    %40 = arith.truncf %37 : vector<8x128xf32> to vector<8x128xbf16>
    %cst_27 = arith.constant dense<0.000000e+00> : vector<8x128xf32>
    %41 = tpu.matmul %40, %39, %cst_27 {dimension_numbers = #tpu.dot_dimension_numbers<[1], [0], [0], [1], [0, 0, 1, 1], [], []>} : vector<8x128xbf16>, vector<128x128xbf16>, vector<8x128xf32> -> vector<8x128xf32>
    %c4_28 = arith.constant 4 : index
    %c0_29 = arith.constant 0 : index
    %42 = vector.load %arg3[%c4_28, %c0_29] : memref<8x128xf32, #tpu.memory_space<vmem>>, vector<1x128xf32>
    %43 = vector.broadcast %42 : vector<1x128xf32> to vector<8x128xf32>
    %44 = arith.addf %41, %43 : vector<8x128xf32>
    %cst_30 = arith.constant 0.000000e+00 : f32
    %45 = vector.broadcast %cst_30 : f32 to vector<8x128xf32>
    %46 = arith.maximumf %44, %45 : vector<8x128xf32>
    %c0_31 = arith.constant 0 : index
    %c0_32 = arith.constant 0 : index
    %47 = vector.load %arg4[%c0_31, %c0_32] : memref<8x128xf32, #tpu.memory_space<vmem>>, vector<8x128xf32>
    tpu.vector_store %arg4[%c0_31, %c0_32], %46 {strides = array<i32>} : memref<8x128xf32, #tpu.memory_space<vmem>>, vector<8x128xf32>,
    return
  }
  func.func @transform_0(%arg0: i32) -> (i32, i32) {
    %c0_i32 = arith.constant 0 : i32
    %c0_i32_0 = arith.constant 0 : i32
    return %arg0, %c0_i32 : i32, i32
  }
  func.func @transform_1(%arg0: i32) -> (i32, i32, i32) {
    %c0_i32 = arith.constant 0 : i32
    %c0_i32_0 = arith.constant 0 : i32
    %c0_i32_1 = arith.constant 0 : i32
    %c0_i32_2 = arith.constant 0 : i32
    return %c0_i32, %c0_i32_0, %c0_i32_1 : i32, i32, i32
  }
  func.func @transform_2(%arg0: i32) -> (i32, i32) {
    %c0_i32 = arith.constant 0 : i32
    %c0_i32_0 = arith.constant 0 : i32
    %c0_i32_1 = arith.constant 0 : i32
    return %c0_i32, %c0_i32_0 : i32, i32
  }
  func.func @transform_3(%arg0: i32) -> (i32, i32) {
    %c0_i32 = arith.constant 0 : i32
    %c0_i32_0 = arith.constant 0 : i32
    return %arg0, %c0_i32 : i32, i32
  }
}

</mosaic_0001>

<bundles_post_ra>
// kernel: mlp_encoder_forward.1
= control target key start
LH: loop header
LB: loop body
LE: loop exit
PB: predicated region body
PF: predicated region fallthrough
CT: control target
= control target key end

     0   :  { %8 = vsyncpa [#allocation3], 0  ;;  %s1022_s0 = inlined_call_operand.hbm [shape: f32[8,96], index: 0, kind: input, shape index: {}]   ;;  %s1023_s1 = inlined_call_operand.hbm [shape: bf16[5,128,128], index: 1, kind: input, shape index: {}]   ;;  %s1024_s2 = inlined_call_operand.hbm [shape: f32[8,128], index: 2, kind: input, shape index: {}]   ;;  %s1025_s3 = inlined_call_operand.hbm [shape: f32[8,128], index: 3, kind: output, shape index: {}]  }
   0x1   :  { %9 = vsyncpa [#allocation6], 0 }
   0x2   :  { %10 = vsyncpa [#allocation4], 0  ;;  %s933_s12 = smov [#allocation5]  }
   0x3   :  { %s26_s13 = sshll.u32 %s933_s12, 4  ;;  %s27_s13 = int_to_ptr.vmem [resolvable:$true] %s26_s13 }
   0x4   :  { %s855_s14 = scalar_lea.vmem %s27_s13, 5120  ;;  %p860_p1 = scmp.lt.s32.totalorder %s27_s13, %s27_s13 }
   0x5   :  { %p856_p0 = scmp.ne.s32.totalorder %s27_s13, %s855_s14  ;;  %p861_p2 = scmp.lt.s32.totalorder %s855_s14, %s855_s14 }
   0x7   :  { %p862_p3 = por %p861_p2, %p860_p1 }
   0x9   :  { %p863_p4 = pnand %p862_p3, %p856_p0 }
   0xb   :  { %866 = shalt.err (!%p863_p4)
}
   0xc   :  { %s934_s15 = smov 64   ;;  %s935_s16 = smov 4  }
   0xd   :  { %32 = dma.hbm_to_vmem [thread:$0]  %s1023_s1, 5120, %s27_s13, [#allocation6], %s934_s15, %s934_s15, %s935_s16  }
   0xe   :  { %s936_s19 = smov [#allocation2]   ;;  %s937_s21 = smov [#allocation7]  }
   0xf   :  { %s17_s20 = sshll.u32 %s936_s19, 4  ;;  %s39_s22 = sshll.u32 %s937_s21, 4  ;;  %s18_s20 = int_to_ptr.vmem [resolvable:$true] %s17_s20  ;;  %s40_s22 = int_to_ptr.vmem [resolvable:$true] %s39_s22 }
  0x10   :  { %s875_s23 = scalar_lea.vmem %s18_s20, 128  ;;  %p880_p6 = scmp.lt.s32.totalorder %s18_s20, %s18_s20 }
  0x11   :  { %p876_p5 = scmp.ne.s32.totalorder %s18_s20, %s875_s23  ;;  %p881_p7 = scmp.lt.s32.totalorder %s875_s23, %s875_s23 }
  0x13   :  { %p882_p8 = por %p881_p7, %p880_p6 }
  0x15   :  { %p883_p9 = pnand %p882_p8, %p876_p5 }
  0x17   :  { %886 = shalt.err (!%p883_p9)
}
  0x18   :  { %20 = dma.hbm_to_vmem [thread:$0]  %s1022_s0, 128, %s18_s20, [#allocation3]  }
  0x19   :  { %s895_s26 = scalar_lea.vmem %s40_s22, 128  ;;  %p900_p11 = scmp.lt.s32.totalorder %s40_s22, %s40_s22 }
  0x1a   :  { %p896_p10 = scmp.ne.s32.totalorder %s40_s22, %s895_s26  ;;  %p901_p12 = scmp.lt.s32.totalorder %s895_s26, %s895_s26 }
  0x1c   :  { %p902_p13 = por %p901_p12, %p900_p11 }
  0x1e   :  { %p903_p0 = pnand %p902_p13, %p896_p10 }
  0x20   :  { %906 = shalt.err (!%p903_p0)
}
  0x21   :  { %42 = dma.hbm_to_vmem [thread:$0]  %s1024_s2, 128, %s40_s22, [#allocation6]  }
  0x22   :  { %927 = dma.done.wait [#allocation3], 128  }
  0x23   :  { %928 = vsyncadd [#allocation3], 4294967168 }
  0x24   :  { %929 = dma.done.wait [#allocation6], 5248  }
  0x25   :  { %930 = vsyncadd [#allocation6], 4294962048  ;;  %v938_v0 = vmov 0.0   ;;  %vm939_vm0 = vmmov 0   ;;  %v809_v1 = vld [vmem:[#allocation5 + $0x28] sm:$0xff]   ;;  %v810_v2 = vld [vmem:[#allocation5 + $0x20] sm:$0xff]  }
  0x26   :  { %705 = vmatprep.subr.bf16.mxu0 %v938_v0  ;;  %717 = vmatprep.mubr.msk.bf16.mxu0 %vm939_vm0, %v938_v0  ;;  %v811_v3 = vld [vmem:[#allocation5 + $0x18] sm:$0xff]   ;;  %v816_v5 = vld [vmem:[#allocation5 + $0x70] sm:$0xff]   ;;  %v813_v7 = vld [vmem:[#allocation5 + $0x8] sm:$0xff]   ;;  %vm108_vm1 = vcmask 785408   ;;  %s940_s0 = smov [#allocation8]  }
  0x27   :  { %721 = vmatprep.subr.bf16.mxu1 %v938_v0  ;;  %737 = vmatprep.mubr.msk.bf16.mxu1 %vm939_vm0, %v938_v0  ;;  %v815_v4 = vld [vmem:[#allocation5 + $0x78] sm:$0xff]   ;;  %v812_v6 = vld [vmem:[#allocation5 + $0x10] sm:$0xff]   ;;  %v817_v8 = vld [vmem:[#allocation5 + $0x68] sm:$0xff]   ;;  %s608_s2 = sshll.u32 %s940_s0, 4  ;;  %s609_s2 = int_to_ptr.vmem [resolvable:$true] %s608_s2 }
  0x28   :  { %706 = vmatpush3.bf16.msra.mxu0 %v809_v1  ;;  %722 = vmatpush3.bf16.msra.mxu1 %v815_v4  ;;  %v818_v9 = vld [vmem:[#allocation5 + $0x60] sm:$0xff]   ;;  %v53_v11 = vld [vmem:[#allocation2] sm:$0xff]  ;;  %v820_v14 = vld [vmem:[#allocation5 + $0x50] sm:$0xff]   ;;  %s907_s28 = scalar_lea.vmem %s609_s2, 128  ;;  %p912_p2 = scmp.lt.s32.totalorder %s609_s2, %s609_s2 }
  0x29   :  { %707 = vmatprep.subr.bf16.mxu0 %v938_v0  ;;  %723 = vmatprep.subr.bf16.mxu1 %v938_v0  ;;  %v814_v10 = vld [vmem:[#allocation5] sm:$0xff]   ;;  %v819_v12 = vld [vmem:[#allocation5 + $0x58] sm:$0xff]   ;;  %v66_v13 = vpack.c.bf16 %v53_v11, %v53_v11  ;;  %v821_v15 = vld [vmem:[#allocation5 + $0x48] sm:$0xff]   ;;  %p908_p1 = scmp.ne.s32.totalorder %s609_s2, %s907_s28  ;;  %p913_p3 = scmp.lt.s32.totalorder %s907_s28, %s907_s28 }
  0x2a   :  { %v822_v16 = vld [vmem:[#allocation5 + $0x40] sm:$0xff]   ;;  %v823_v17 = vld [vmem:[#allocation5 + $0xb8] sm:$0xff]   ;;  %v824_v18 = vld [vmem:[#allocation5 + $0xb0] sm:$0xff]  }
  0x2b   :  { %v825_v19 = vld [vmem:[#allocation5 + $0xa8] sm:$0xff]   ;;  %v826_v20 = vld [vmem:[#allocation5 + $0xa0] sm:$0xff]   ;;  %v827_v21 = vld [vmem:[#allocation5 + $0x98] sm:$0xff]   ;;  %p914_p4 = por %p913_p3, %p912_p2 }
  0x2c   :  { %708 = vmatpush3.bf16.msra.mxu0 %v810_v2  ;;  %724 = vmatpush3.bf16.msra.mxu1 %v816_v5  ;;  %v828_v22 = vld [vmem:[#allocation5 + $0x90] sm:$0xff]   ;;  %v618_v23 = vld [vmem:[#allocation7] ss:$0 sm:$0xff]  ;;  %v829_v31 = vld [vmem:[#allocation5 + $0x88] sm:$0xff]  }
  0x2d   :  { %709 = vmatprep.subr.bf16.mxu0 %v938_v0  ;;  %725 = vmatprep.subr.bf16.mxu1 %v938_v0  ;;  %v830_v32 = vld [vmem:[#allocation5 + $0x80] sm:$0xff]   ;;  %v831_v33 = vld [vmem:[#allocation5 + $0xf8] sm:$0xff]   ;;  %v832_v34 = vld [vmem:[#allocation5 + $0xf0] sm:$0xff]   ;;  %p915_p5 = pnand %p914_p4, %p908_p1 }
  0x2e   :  { %v833_v35 = vld [vmem:[#allocation5 + $0xe8] sm:$0xff]   ;;  %v834_v36 = vld [vmem:[#allocation5 + $0xe0] sm:$0xff]   ;;  %v835_v37 = vld [vmem:[#allocation5 + $0xd8] sm:$0xff]  }
  0x2f   :  { %v836_v38 = vld [vmem:[#allocation5 + $0xd0] sm:$0xff]   ;;  %v626_v39 = vld [vmem:[#allocation7 + $0x1] ss:$0 sm:$0xff]  ;;  %v837_v47 = vld [vmem:[#allocation5 + $0xc8] sm:$0xff]  }
  0x30   :  { %710 = vmatpush3.bf16.msra.mxu0 %v811_v3  ;;  %726 = vmatpush3.bf16.msra.mxu1 %v817_v8  ;;  %v838_v48 = vld [vmem:[#allocation5 + $0xc0] sm:$0xff]   ;;  %v839_v49 = vld [vmem:[#allocation5 + $0x138] sm:$0xff]   ;;  %v840_v50 = vld [vmem:[#allocation5 + $0x130] sm:$0xff]  }
  0x31   :  { %711 = vmatprep.subr.bf16.mxu0 %v938_v0  ;;  %727 = vmatprep.subr.bf16.mxu1 %v938_v0  ;;  %v841_v51 = vld [vmem:[#allocation5 + $0x128] sm:$0xff]   ;;  %v842_v52 = vld [vmem:[#allocation5 + $0x120] sm:$0xff]   ;;  %v843_v53 = vld [vmem:[#allocation5 + $0x118] sm:$0xff]  }
  0x32   :  { %v844_v54 = vld [vmem:[#allocation5 + $0x110] sm:$0xff]   ;;  %v635_v55 = vld [vmem:[#allocation7 + $0x2] ss:$0 sm:$0xff]  ;;  %v845_v63 = vld [vmem:[#allocation5 + $0x108] sm:$0xff]  }
  0x33   :  { %v846_v1 = vld [vmem:[#allocation5 + $0x100] sm:$0xff]  }
  0x34   :  { %712 = vmatpush3.bf16.msra.mxu0 %v812_v6  ;;  %728 = vmatpush3.bf16.msra.mxu1 %v818_v9  ;;  %v644_v2 = vld [vmem:[#allocation7 + $0x3] ss:$0 sm:$0xff] }
  0x35   :  { %713 = vmatprep.subr.bf16.mxu0 %v938_v0  ;;  %729 = vmatprep.subr.bf16.mxu1 %v938_v0 }
  0x38   :  { %714 = vmatpush3.bf16.msra.mxu0 %v813_v7  ;;  %730 = vmatpush3.bf16.msra.mxu1 %v819_v12 }
  0x39   :  { %715 = vmatprep.subr.bf16.mxu0 %v938_v0  ;;  %731 = vmatprep.subr.bf16.mxu1 %v938_v0 }
  0x3c   :  { %716 = vmatpush3.bf16.msra.mxu0 %v814_v10  ;;  %732 = vmatpush3.bf16.msra.mxu1 %v820_v14  ;;  %v653_v10 = vld [vmem:[#allocation7 + $0x4] ss:$0 sm:$0xff] }
  0x3d   :  { %741 = vmatprep.subr.bf16.mxu0 %v938_v0  ;;  %733 = vmatprep.subr.bf16.mxu1 %v938_v0 }
  0x3f   :  { %718 = vmatmul.mubr.msk.bf16.vlgmr.msra.gmra.mxu0 %vm108_vm1, %v66_v13 }
  0x40   :  { %757 = vmatprep.mubr.msk.bf16.mxu0 %vm939_vm0, %v938_v0  ;;  %734 = vmatpush3.bf16.msra.mxu1 %v821_v15 }
  0x41   :  { %735 = vmatprep.subr.bf16.mxu1 %v938_v0  ;;  %742 = vmatpush3.bf16.msra.mxu0 %v823_v17 }
  0x42   :  { %743 = vmatprep.subr.bf16.mxu0 %v938_v0 }
  0x44   :  { %736 = vmatpush3.bf16.msra.mxu1 %v822_v16 }
  0x45   :  { %761 = vmatprep.subr.bf16.mxu1 %v938_v0  ;;  %744 = vmatpush3.bf16.msra.mxu0 %v824_v18 }
  0x46   :  { %745 = vmatprep.subr.bf16.mxu0 %v938_v0 }
  0x49   :  { %746 = vmatpush3.bf16.msra.mxu0 %v825_v19 }
  0x4a   :  { %747 = vmatprep.subr.bf16.mxu0 %v938_v0 }
  0x4d   :  { %748 = vmatpush3.bf16.msra.mxu0 %v826_v20 }
  0x4e   :  { %749 = vmatprep.subr.bf16.mxu0 %v938_v0 }
  0x51   :  { %750 = vmatpush3.bf16.msra.mxu0 %v827_v21 }
  0x52   :  { %751 = vmatprep.subr.bf16.mxu0 %v938_v0 }
  0x55   :  { %752 = vmatpush3.bf16.msra.mxu0 %v828_v22 }
  0x56   :  { %753 = vmatprep.subr.bf16.mxu0 %v938_v0 }
  0x59   :  { %754 = vmatpush3.bf16.msra.mxu0 %v829_v31 }
  0x5a   :  { %755 = vmatprep.subr.bf16.mxu0 %v938_v0 }
  0x5d   :  { %756 = vmatpush3.bf16.msra.mxu0 %v830_v32 }
  0x5e   :  { %781 = vmatprep.subr.bf16.mxu0 %v938_v0 }
  0xff   :  { %v146_v24 = vpop.f32.mrf.mxu0 }
 0x100   :  { %v147_v25 = vadd.f32 %v618_v23, %v146_v24 }
 0x101   :  { %v719_v26 = vpop.f32.mrf.mxu0 }
 0x102   :  { %v152_v27 = vmax.f32 %v147_v25, 0.0 }
 0x103   :  { %v149_v28 = vpop.f32.mrf.mxu0 }
 0x104   :  { %v170_v29 = vpack.c.bf16 %v152_v27, %v152_v27 }
 0x105   :  { %v720_v30 = vpop.f32.mrf.mxu0 }
 0x106   :  { %738 = vmatmul.mubr.bf16.vlgmr.msra.gmra.mxu1 %v170_v29 }
 0x107   :  { %777 = vmatprep.mubr.msk.bf16.mxu1 %vm939_vm0, %v938_v0  ;;  %762 = vmatpush3.bf16.msra.mxu1 %v831_v33 }
 0x108   :  { %763 = vmatprep.subr.bf16.mxu1 %v938_v0 }
 0x10b   :  { %764 = vmatpush3.bf16.msra.mxu1 %v832_v34 }
 0x10c   :  { %765 = vmatprep.subr.bf16.mxu1 %v938_v0 }
 0x10f   :  { %766 = vmatpush3.bf16.msra.mxu1 %v833_v35 }
 0x110   :  { %767 = vmatprep.subr.bf16.mxu1 %v938_v0 }
 0x113   :  { %768 = vmatpush3.bf16.msra.mxu1 %v834_v36 }
 0x114   :  { %769 = vmatprep.subr.bf16.mxu1 %v938_v0 }
 0x117   :  { %770 = vmatpush3.bf16.msra.mxu1 %v835_v37 }
 0x118   :  { %771 = vmatprep.subr.bf16.mxu1 %v938_v0 }
 0x11b   :  { %772 = vmatpush3.bf16.msra.mxu1 %v836_v38 }
 0x11c   :  { %773 = vmatprep.subr.bf16.mxu1 %v938_v0 }
 0x11f   :  { %774 = vmatpush3.bf16.msra.mxu1 %v837_v47 }
 0x120   :  { %775 = vmatprep.subr.bf16.mxu1 %v938_v0 }
 0x123   :  { %776 = vmatpush3.bf16.msra.mxu1 %v838_v48 }
 0x1c6   :  { %v258_v40 = vpop.f32.mrf.mxu1 }
 0x1c7   :  { %v259_v41 = vadd.f32 %v626_v39, %v258_v40 }
 0x1c8   :  { %v739_v42 = vpop.f32.mrf.mxu1 }
 0x1c9   :  { %v264_v43 = vmax.f32 %v259_v41, 0.0 }
 0x1ca   :  { %v261_v44 = vpop.f32.mrf.mxu1 }
 0x1cb   :  { %v282_v45 = vpack.c.bf16 %v264_v43, %v264_v43 }
 0x1cc   :  { %v740_v46 = vpop.f32.mrf.mxu1 }
 0x1cd   :  { %758 = vmatmul.mubr.bf16.vlgmr.msra.gmra.mxu0 %v282_v45 }
 0x1ce   :  { %797 = vmatprep.mubr.msk.bf16.mxu0 %vm939_vm0, %v938_v0  ;;  %782 = vmatpush3.bf16.msra.mxu0 %v839_v49 }
 0x1cf   :  { %783 = vmatprep.subr.bf16.mxu0 %v938_v0 }
 0x1d2   :  { %784 = vmatpush3.bf16.msra.mxu0 %v840_v50 }
 0x1d3   :  { %785 = vmatprep.subr.bf16.mxu0 %v938_v0 }
 0x1d6   :  { %786 = vmatpush3.bf16.msra.mxu0 %v841_v51 }
 0x1d7   :  { %787 = vmatprep.subr.bf16.mxu0 %v938_v0 }
 0x1da   :  { %788 = vmatpush3.bf16.msra.mxu0 %v842_v52 }
 0x1db   :  { %789 = vmatprep.subr.bf16.mxu0 %v938_v0 }
 0x1de   :  { %790 = vmatpush3.bf16.msra.mxu0 %v843_v53 }
 0x1df   :  { %791 = vmatprep.subr.bf16.mxu0 %v938_v0 }
 0x1e2   :  { %792 = vmatpush3.bf16.msra.mxu0 %v844_v54 }
 0x1e3   :  { %793 = vmatprep.subr.bf16.mxu0 %v938_v0 }
 0x1e6   :  { %794 = vmatpush3.bf16.msra.mxu0 %v845_v63 }
 0x1e7   :  { %795 = vmatprep.subr.bf16.mxu0 %v938_v0 }
 0x1ea   :  { %796 = vmatpush3.bf16.msra.mxu0 %v846_v1 }
 0x28d   :  { %v370_v56 = vpop.f32.mrf.mxu0 }
 0x28e   :  { %v371_v57 = vadd.f32 %v635_v55, %v370_v56 }
 0x28f   :  { %v759_v58 = vpop.f32.mrf.mxu0 }
 0x290   :  { %v376_v59 = vmax.f32 %v371_v57, 0.0 }
 0x291   :  { %v373_v60 = vpop.f32.mrf.mxu0 }
 0x292   :  { %v394_v61 = vpack.c.bf16 %v376_v59, %v376_v59 }
 0x293   :  { %v760_v62 = vpop.f32.mrf.mxu0 }
 0x294   :  { %778 = vmatmul.mubr.bf16.vlgmr.msra.gmra.mxu1 %v394_v61 }
 0x354   :  { %v482_v3 = vpop.f32.mrf.mxu1 }
 0x355   :  { %v483_v4 = vadd.f32 %v644_v2, %v482_v3 }
 0x356   :  { %v779_v5 = vpop.f32.mrf.mxu1 }
 0x357   :  { %v488_v6 = vmax.f32 %v483_v4, 0.0 }
 0x358   :  { %v485_v7 = vpop.f32.mrf.mxu1 }
 0x359   :  { %v506_v8 = vpack.c.bf16 %v488_v6, %v488_v6 }
 0x35a   :  { %v780_v9 = vpop.f32.mrf.mxu1 }
 0x35b   :  { %798 = vmatmul.mubr.bf16.vlgmr.msra.gmra.mxu0 %v506_v8 }
 0x41b   :  { %v594_v11 = vpop.f32.mrf.mxu0 }
 0x41c   :  { %v595_v12 = vadd.f32 %v653_v10, %v594_v11 }
 0x41d   :  { %v799_v13 = vpop.f32.mrf.mxu0 }
 0x41e   :  { %v600_v14 = vmax.f32 %v595_v12, 0.0 }
 0x41f   :  { %v597_v0 = vpop.f32.mrf.mxu0 }
 0x420   :  { %601 = vst [vmem:[#allocation8] sm:$0xff] %v600_v14 }
 0x421   :  { %v800_v15 = vpop.f32.mrf.mxu0 }
 0x422   :  { %918 = shalt.err (!%p915_p5)
}
 0x423   :  { %611 = dma.vmem_to_hbm [thread:$0]  %s609_s2, 128, %s1025_s3, [#allocation4]  }
 0x424   :  { %931 = dma.done.wait [#allocation4], 128  }
 0x425   :  { %932 = vsyncadd [#allocation4], 4294967168 }
 0x426   :  { %615 = vsyncpa [#allocation3], 1 }
 0x427   :  { %616 = vsyncpa [#allocation6], 1 }
 0x428   :  { %617 = vsyncpa [#allocation4], 1 }

</bundles_post_ra>
